<compile_context>
chip_gen: v6e
topology: v6e:2x2x1
jax: 0.10.0
libtpu: 0.0.40
codegen_flags: <defaults>
</compile_context>

<pallas_src>
import functools
import math

import jax
import jax.numpy as jnp
from jax.experimental import pallas as pl
from jax.experimental.pallas import tpu as pltpu

_MIB = 1024 * 1024


# ---------------------------------------------------------------------------
# Helpers
# ---------------------------------------------------------------------------
def _sigmoid(x):
    # sigmoid(x) == 0.5 * tanh(0.5 * x) + 0.5 : one EUP push instead of
    # exp + reciprocal; the extra mul/add ride free VPU slots.
    return 0.5 * jnp.tanh(0.5 * x) + 0.5


def _layer_vmem_bytes(Tb, Bb, D, H):
    """Estimated VMEM for one recurrent-layer pallas_call (double-buffered IO)."""
    G = 4 * H
    bf, f4 = 2, 4
    x_blk = 2 * Tb * Bb * D * bf
    w_ih = 2 * D * G * bf
    bias = 2 * G * f4
    w_hh = 2 * H * G * bf
    out = 2 * Tb * Bb * H * bf
    scr = 2 * Bb * H * f4
    return x_blk + w_ih + bias + w_hh + out + scr


def _vmem_limit(est_bytes):
    # >= the 32 MiB scoped default, <= v7x's 64 MiB physical VMEM per core.
    return int(min(64 * _MIB, max(32 * _MIB, 2 * est_bytes)))


def _choose_time_block(T, Bb, D, H, cap=16, budget=40 * _MIB):
    """Largest Tb <= cap whose block footprint fits the (v7x-safe) budget."""
    Tb = min(T, cap)
    while Tb > 1 and _layer_vmem_bytes(Tb, Bb, D, H) > budget:
        Tb -= 1
    return max(Tb, 1)


def _batch_block(B):
    """Split batch over the 'parallel' grid axis (2 TCs on v7x) only when the
    sub-blocks stay sublane-dense (multiples of 8)."""
    if B % 16 == 0:
        return B // 2
    return B


# ---------------------------------------------------------------------------
# Recurrent core shared by both kernels (gate order [i, f, o, g]).
# Input projection is fused: per step, gates = x_s @ W_ih + h @ W_hh + b.
# ---------------------------------------------------------------------------
def _recurrent_steps(x_ref, w_ih, b, w_hh, h, c, hs_ref, t0, t_valid, masked):
    Tb = x_ref.shape[0]
    H = h.shape[-1]
    for s in range(Tb):  # static trip count -> fully unrolled straight-line code
        gates = (
            jnp.dot(x_ref[s], w_ih, preferred_element_type=jnp.float32)
            + jnp.dot(h.astype(jnp.bfloat16), w_hh,
                      preferred_element_type=jnp.float32)
            + b)
        sg = _sigmoid(gates[:, :3 * H])          # i | f | o (contiguous)
        i = sg[:, 0:H]
        f = sg[:, H:2 * H]
        o = sg[:, 2 * H:3 * H]
        g = jnp.tanh(gates[:, 3 * H:4 * H])
        c_new = f * c + i * g
        h_new = o * jnp.tanh(c_new)
        if masked:
            # Freeze the state on padded time steps (t >= true sequence length).
            keep = (t0 + s < t_valid).astype(jnp.float32)
            c = c + keep * (c_new - c)
            h = h + keep * (h_new - h)
        else:
            c, h = c_new, h_new
        if hs_ref is not None:
            hs_ref[s] = h.astype(hs_ref.dtype)
    return h, c


# ---------------------------------------------------------------------------
# Intermediate-layer kernel: fused projection + recurrence, emits (T, B, H)
# hidden sequence in bf16. Grid = (batch blocks [parallel], time blocks).
# ---------------------------------------------------------------------------
def _lstm_seq_kernel(x_ref, w_ih_ref, b_ref, w_hh_ref, hs_ref,
                     h_scr, c_scr, *, t_valid, masked):
    @pl.when(pl.program_id(1) == 0)
    def _():
        h_scr[...] = jnp.zeros_like(h_scr)
        c_scr[...] = jnp.zeros_like(c_scr)

    Tb = x_ref.shape[0]
    t0 = pl.program_id(1) * Tb
    h, c = _recurrent_steps(x_ref, w_ih_ref[...], b_ref[...], w_hh_ref[...],
                            h_scr[...], c_scr[...], hs_ref, t0, t_valid, masked)
    h_scr[...] = h
    c_scr[...] = c


# ---------------------------------------------------------------------------
# Last-layer kernel with fused FC head (Linear->Tanh->Linear->ReLU->Linear):
# no (T, B, H) writeback; only the (B, O) head output at the final time block.
# ---------------------------------------------------------------------------
def _lstm_head_kernel(x_ref, w_ih_ref, b_ref, w_hh_ref,
                      w1_ref, b1_ref, w2_ref, b2_ref, w3_ref, b3_ref,
                      out_ref, h_scr, c_scr, *, t_valid, masked):
    @pl.when(pl.program_id(1) == 0)
    def _():
        h_scr[...] = jnp.zeros_like(h_scr)
        c_scr[...] = jnp.zeros_like(c_scr)

    Tb = x_ref.shape[0]
    t0 = pl.program_id(1) * Tb
    h, c = _recurrent_steps(x_ref, w_ih_ref[...], b_ref[...], w_hh_ref[...],
                            h_scr[...], c_scr[...], None, t0, t_valid, masked)
    h_scr[...] = h
    c_scr[...] = c

    @pl.when(pl.program_id(1) == pl.num_programs(1) - 1)
    def _():
        h1 = jnp.tanh(
            jnp.dot(h.astype(jnp.bfloat16), w1_ref[...],
                    preferred_element_type=jnp.float32) + b1_ref[...])
        h2 = jnp.maximum(
            jnp.dot(h1.astype(jnp.bfloat16), w2_ref[...],
                    preferred_element_type=jnp.float32) + b2_ref[...], 0.0)
        out_ref[...] = (
            jnp.dot(h2.astype(jnp.bfloat16), w3_ref[...],
                    preferred_element_type=jnp.float32) + b3_ref[...])


# ---------------------------------------------------------------------------
# Per-layer wrappers
# ---------------------------------------------------------------------------
def lstm_seq_layer(x_tbd, layer, *, Tb, Bb, t_valid):
    """x_tbd: (Tp, B, D) bf16 (time-padded). Returns (Tp, B, H) bf16."""
    Tp, B, D = x_tbd.shape
    H = layer["w_hh_t"].shape[0]
    G = 4 * H
    masked = (t_valid != Tp)
    est = _layer_vmem_bytes(Tb, Bb, D, H)
    kernel = functools.partial(_lstm_seq_kernel, t_valid=t_valid, masked=masked)
    return pl.pallas_call(
        kernel,
        out_shape=jax.ShapeDtypeStruct((Tp, B, H), jnp.bfloat16),
        grid_spec=pltpu.PrefetchScalarGridSpec(
            num_scalar_prefetch=0,
            grid=(B // Bb, Tp // Tb),
            in_specs=[
                pl.BlockSpec((Tb, Bb, D), lambda b, t: (t, b, 0)),
                pl.BlockSpec((D, G), lambda b, t: (0, 0)),   # loop-invariant
                pl.BlockSpec((1, G), lambda b, t: (0, 0)),   # folded bias (f32)
                pl.BlockSpec((H, G), lambda b, t: (0, 0)),   # loop-invariant
            ],
            out_specs=pl.BlockSpec((Tb, Bb, H), lambda b, t: (t, b, 0)),
            scratch_shapes=[
                pltpu.VMEM((Bb, H), jnp.float32),   # h carry (f32)
                pltpu.VMEM((Bb, H), jnp.float32),   # c carry (f32)
            ],
        ),
        compiler_params=pltpu.CompilerParams(
            dimension_semantics=("parallel", "arbitrary"),
            vmem_limit_bytes=_vmem_limit(est),
        ),
    )(x_tbd, layer["w_ih_t"], layer["b"], layer["w_hh_t"])


def lstm_head_layer(x_tbd, layer, fc, *, Tb, Bb, t_valid):
    """Last LSTM layer + fused FC head. Returns (B, O) f32."""
    Tp, B, D = x_tbd.shape
    H = layer["w_hh_t"].shape[0]
    G = 4 * H
    O = fc["w3"].shape[1]
    masked = (t_valid != Tp)
    fc_bytes = sum(2 * int(fc[k].size) * fc[k].dtype.itemsize
                   for k in ("w1", "b1", "w2", "b2", "w3", "b3"))
    est = _layer_vmem_bytes(Tb, Bb, D, H) + fc_bytes
    kernel = functools.partial(_lstm_head_kernel, t_valid=t_valid, masked=masked)
    return pl.pallas_call(
        kernel,
        out_shape=jax.ShapeDtypeStruct((B, O), jnp.float32),
        grid_spec=pltpu.PrefetchScalarGridSpec(
            num_scalar_prefetch=0,
            grid=(B // Bb, Tp // Tb),
            in_specs=[
                pl.BlockSpec((Tb, Bb, D), lambda b, t: (t, b, 0)),
                pl.BlockSpec((D, G), lambda b, t: (0, 0)),
                pl.BlockSpec((1, G), lambda b, t: (0, 0)),
                pl.BlockSpec((H, G), lambda b, t: (0, 0)),
                pl.BlockSpec(fc["w1"].shape, lambda b, t: (0, 0)),
                pl.BlockSpec(fc["b1"].shape, lambda b, t: (0, 0)),
                pl.BlockSpec(fc["w2"].shape, lambda b, t: (0, 0)),
                pl.BlockSpec(fc["b2"].shape, lambda b, t: (0, 0)),
                pl.BlockSpec(fc["w3"].shape, lambda b, t: (0, 0)),
                pl.BlockSpec(fc["b3"].shape, lambda b, t: (0, 0)),
            ],
            out_specs=pl.BlockSpec((Bb, O), lambda b, t: (b, 0)),
            scratch_shapes=[
                pltpu.VMEM((Bb, H), jnp.float32),
                pltpu.VMEM((Bb, H), jnp.float32),
            ],
        ),
        compiler_params=pltpu.CompilerParams(
            dimension_semantics=("parallel", "arbitrary"),
            vmem_limit_bytes=_vmem_limit(est),
        ),
    )(x_tbd, layer["w_ih_t"], layer["b"], layer["w_hh_t"],
      fc["w1"], fc["b1"], fc["w2"], fc["b2"], fc["w3"], fc["b3"])


# ---------------------------------------------------------------------------
# Full model forward (matches PyTorch: LSTM (zero h0/c0) -> fc(out[:, -1, :])).
# ---------------------------------------------------------------------------
def lstm_model_forward(x_btd, params):
    x_tbd = jnp.transpose(x_btd, (1, 0, 2)).astype(jnp.bfloat16)   # (T, B, D)
    T, B, D0 = x_tbd.shape
    layers = params["lstm"]
    H = layers[0]["w_hh_t"].shape[0]

    Bb = _batch_block(B)
    Tb = _choose_time_block(T, Bb, max(D0, H), H)
    Tp = -(-T // Tb) * Tb                     # pad T up to a multiple of Tb
    if Tp != T:
        x_tbd = jnp.pad(x_tbd, ((0, Tp - T), (0, 0), (0, 0)))

    for layer in layers[:-1]:
        x_tbd = lstm_seq_layer(x_tbd, layer, Tb=Tb, Bb=Bb, t_valid=T)
    return lstm_head_layer(x_tbd, layers[-1], params["fc"],
                           Tb=Tb, Bb=Bb, t_valid=T)


# ---------------------------------------------------------------------------
# Parameter init: pre-transposed weights, folded bias, gates reordered to
# [i, f, o, g], matmul operands stored in bf16 (biases stay f32).
# ---------------------------------------------------------------------------
def _reorder_gates_rows(w):
    i, f, g, o = jnp.split(w, 4, axis=0)       # torch order [i, f, g, o]
    return jnp.concatenate([i, f, o, g], axis=0)


def init_params(key, input_dim, hidden_dim, num_layers, output_dim):
    params = {"lstm": [], "fc": {}}
    H = hidden_dim
    stdv = 1.0 / math.sqrt(H)
    for l in range(num_layers):
        d_in = input_dim if l == 0 else H
        key, k1, k2, k3, k4 = jax.random.split(key, 5)
        w_ih = jax.random.uniform(k1, (4 * H, d_in), jnp.float32, -stdv, stdv)
        w_hh = jax.random.uniform(k2, (4 * H, H), jnp.float32, -stdv, stdv)
        b_ih = jax.random.uniform(k3, (4 * H,), jnp.float32, -stdv, stdv)
        b_hh = jax.random.uniform(k4, (4 * H,), jnp.float32, -stdv, stdv)
        w_ih = _reorder_gates_rows(w_ih)
        w_hh = _reorder_gates_rows(w_hh)
        b = _reorder_gates_rows((b_ih + b_hh).reshape(4 * H, 1)).reshape(1, 4 * H)
        params["lstm"].append({
            "w_ih_t": jnp.transpose(w_ih).astype(jnp.bfloat16),   # (D_in, 4H)
            "w_hh_t": jnp.transpose(w_hh).astype(jnp.bfloat16),   # (H, 4H)
            "b": b.astype(jnp.float32),                           # (1, 4H)
        })
    h1, h2 = H // 2, H // 4
    for i, (din, dout) in enumerate(
            [(H, h1), (h1, h2), (h2, output_dim)], start=1):
        key, kw, kb = jax.random.split(key, 3)
        bound = 1.0 / math.sqrt(din)
        params["fc"][f"w{i}"] = jax.random.uniform(
            kw, (din, dout), jnp.float32, -bound, bound).astype(jnp.bfloat16)
        params["fc"][f"b{i}"] = jax.random.uniform(
            kb, (1, dout), jnp.float32, -bound, bound)
    return params


if __name__ == "__main__":
    B, T, D = 2, 8, 16          # batch, sequence length, input_dim
    H, L, O = 32, 2, 4          # hidden_dim, num_layers, output_dim

    key = jax.random.PRNGKey(0)
    key, kx, kp = jax.random.split(key, 3)
    x = jax.random.normal(kx, (B, T, D), dtype=jnp.float32)
    params = init_params(kp, D, H, L, O)

    out = lstm_model_forward(x, params)
    out = jax.block_until_ready(out)
    assert out.shape == (B, O), out.shape
    print("KERNEL_OK")
</pallas_src>

<mosaic_0001>
module attributes {stable_mosaic.version = 11 : i64} {
  func.func @_lstm_seq_kernel(%arg0: i32, %arg1: i32, %arg2: memref<8x2x16xbf16, #tpu.memory_space<vmem>>, %arg3: memref<16x128xbf16, #tpu.memory_space<vmem>>, %arg4: memref<1x128xf32, #tpu.memory_space<vmem>>, %arg5: memref<32x128xbf16, #tpu.memory_space<vmem>>, %arg6: memref<8x2x32xbf16, #tpu.memory_space<vmem>>, %arg7: memref<2x32xf32, #tpu.memory_space<vmem>>, %arg8: memref<2x32xf32, #tpu.memory_space<vmem>>) attributes {dimension_semantics = [#tpu.dimension_semantics<parallel>, #tpu.dimension_semantics<arbitrary>], iteration_bounds = array<i64: 1, 1>, scalar_prefetch = 0 : i64, scratch_operands = 2 : i64, tpu.core_type = #tpu.core_type<tc>, window_params = [{transform_indices = @transform_0, window_bounds = array<i64: 8, 2, 16>}, {pipeline_mode = #tpu.pipeline_mode<synchronous>, transform_indices = @transform_1, window_bounds = array<i64: 16, 128>}, {pipeline_mode = #tpu.pipeline_mode<synchronous>, transform_indices = @transform_2, window_bounds = array<i64: 1, 128>}, {pipeline_mode = #tpu.pipeline_mode<synchronous>, transform_indices = @transform_3, window_bounds = array<i64: 32, 128>}, {transform_indices = @transform_4, window_bounds = array<i64: 8, 2, 32>}]} {
    %c0_i32 = arith.constant 0 : i32
    %0 = arith.cmpi eq, %arg1, %c0_i32 : i32
    %1 = arith.extui %0 : i1 to i32
    %c0_i32_0 = arith.constant 0 : i32
    %2 = arith.cmpi ne, %1, %c0_i32_0 : i32
    scf.if %2 {
      %cst_94 = arith.constant 0.000000e+00 : f32
      %250 = vector.broadcast %cst_94 : f32 to vector<2x32xf32>
      %c0_95 = arith.constant 0 : index
      %c0_96 = arith.constant 0 : index
      %251 = vector.load %arg7[%c0_95, %c0_96] : memref<2x32xf32, #tpu.memory_space<vmem>>, vector<2x32xf32>
      tpu.vector_store %arg7[%c0_95, %c0_96], %250 {strides = array<i32>} : memref<2x32xf32, #tpu.memory_space<vmem>>, vector<2x32xf32>,
      %cst_97 = arith.constant 0.000000e+00 : f32
      %252 = vector.broadcast %cst_97 : f32 to vector<2x32xf32>
      %c0_98 = arith.constant 0 : index
      %c0_99 = arith.constant 0 : index
      %253 = vector.load %arg8[%c0_98, %c0_99] : memref<2x32xf32, #tpu.memory_space<vmem>>, vector<2x32xf32>
      tpu.vector_store %arg8[%c0_98, %c0_99], %252 {strides = array<i32>} : memref<2x32xf32, #tpu.memory_space<vmem>>, vector<2x32xf32>,
    } else {
    }
    %c0 = arith.constant 0 : index
    %c0_1 = arith.constant 0 : index
    %3 = vector.load %arg3[%c0, %c0_1] : memref<16x128xbf16, #tpu.memory_space<vmem>>, vector<16x128xbf16>
    %c0_2 = arith.constant 0 : index
    %c0_3 = arith.constant 0 : index
    %4 = vector.load %arg4[%c0_2, %c0_3] : memref<1x128xf32, #tpu.memory_space<vmem>>, vector<1x128xf32>
    %c0_4 = arith.constant 0 : index
    %c0_5 = arith.constant 0 : index
    %5 = vector.load %arg5[%c0_4, %c0_5] : memref<32x128xbf16, #tpu.memory_space<vmem>>, vector<32x128xbf16>
    %c0_6 = arith.constant 0 : index
    %c0_7 = arith.constant 0 : index
    %6 = vector.load %arg7[%c0_6, %c0_7] : memref<2x32xf32, #tpu.memory_space<vmem>>, vector<2x32xf32>
    %c0_8 = arith.constant 0 : index
    %c0_9 = arith.constant 0 : index
    %7 = vector.load %arg8[%c0_8, %c0_9] : memref<2x32xf32, #tpu.memory_space<vmem>>, vector<2x32xf32>
    %c0_10 = arith.constant 0 : index
    %c0_11 = arith.constant 0 : index
    %c0_12 = arith.constant 0 : index
    %8 = vector.load %arg2[%c0_10, %c0_11, %c0_12] : memref<8x2x16xbf16, #tpu.memory_space<vmem>>, vector<1x2x16xbf16>
    %9 = vector.shape_cast %8 : vector<1x2x16xbf16> to vector<2x16xbf16>
    %cst = arith.constant dense<0.000000e+00> : vector<2x128xf32>
    %10 = tpu.matmul %9, %3, %cst {dimension_numbers = #tpu.dot_dimension_numbers<[1], [0], [0], [1], [0, 0, 1, 1], [], []>} : vector<2x16xbf16>, vector<16x128xbf16>, vector<2x128xf32> -> vector<2x128xf32>
    %11 = arith.truncf %6 : vector<2x32xf32> to vector<2x32xbf16>
    %cst_13 = arith.constant dense<0.000000e+00> : vector<2x128xf32>
    %12 = tpu.matmul %11, %5, %cst_13 {dimension_numbers = #tpu.dot_dimension_numbers<[1], [0], [0], [1], [0, 0, 1, 1], [], []>} : vector<2x32xbf16>, vector<32x128xbf16>, vector<2x128xf32> -> vector<2x128xf32>
    %13 = arith.addf %10, %12 : vector<2x128xf32>
    %14 = vector.broadcast %4 : vector<1x128xf32> to vector<2x128xf32>
    %15 = arith.addf %13, %14 : vector<2x128xf32>
    %16 = vector.extract_strided_slice %15 {offsets = [0, 0], sizes = [2, 96], strides = [1, 1]} : vector<2x128xf32> to vector<2x96xf32>
    %cst_14 = arith.constant 5.000000e-01 : f32
    %17 = vector.broadcast %cst_14 : f32 to vector<2x96xf32>
    %18 = arith.mulf %17, %16 : vector<2x96xf32>
    %19 = math.tanh %18 : vector<2x96xf32>
    %cst_15 = arith.constant 5.000000e-01 : f32
    %20 = vector.broadcast %cst_15 : f32 to vector<2x96xf32>
    %21 = arith.mulf %20, %19 : vector<2x96xf32>
    %cst_16 = arith.constant 5.000000e-01 : f32
    %22 = vector.broadcast %cst_16 : f32 to vector<2x96xf32>
    %23 = arith.addf %21, %22 : vector<2x96xf32>
    %24 = vector.extract_strided_slice %23 {offsets = [0, 0], sizes = [2, 32], strides = [1, 1]} : vector<2x96xf32> to vector<2x32xf32>
    %25 = vector.extract_strided_slice %23 {offsets = [0, 32], sizes = [2, 32], strides = [1, 1]} : vector<2x96xf32> to vector<2x32xf32>
    %26 = vector.extract_strided_slice %23 {offsets = [0, 64], sizes = [2, 32], strides = [1, 1]} : vector<2x96xf32> to vector<2x32xf32>
    %27 = vector.extract_strided_slice %15 {offsets = [0, 96], sizes = [2, 32], strides = [1, 1]} : vector<2x128xf32> to vector<2x32xf32>
    %28 = math.tanh %27 : vector<2x32xf32>
    %29 = arith.mulf %25, %7 : vector<2x32xf32>
    %30 = arith.mulf %24, %28 : vector<2x32xf32>
    %31 = arith.addf %29, %30 : vector<2x32xf32>
    %32 = math.tanh %31 : vector<2x32xf32>
    %33 = arith.mulf %26, %32 : vector<2x32xf32>
    %34 = arith.truncf %33 : vector<2x32xf32> to vector<2x32xbf16>
    %c0_17 = arith.constant 0 : index
    %c0_18 = arith.constant 0 : index
    %c0_19 = arith.constant 0 : index
    %35 = vector.load %arg6[%c0_17, %c0_18, %c0_19] : memref<8x2x32xbf16, #tpu.memory_space<vmem>>, vector<1x2x32xbf16>
    %36 = vector.shape_cast %35 : vector<1x2x32xbf16> to vector<2x32xbf16>
    %37 = vector.shape_cast %34 : vector<2x32xbf16> to vector<1x2x32xbf16>
    tpu.vector_store %arg6[%c0_17, %c0_18, %c0_19], %37 {strides = array<i32>} : memref<8x2x32xbf16, #tpu.memory_space<vmem>>, vector<1x2x32xbf16>,
    %c1 = arith.constant 1 : index
    %c0_20 = arith.constant 0 : index
    %c0_21 = arith.constant 0 : index
    %38 = vector.load %arg2[%c1, %c0_20, %c0_21] : memref<8x2x16xbf16, #tpu.memory_space<vmem>>, vector<1x2x16xbf16>
    %39 = vector.shape_cast %38 : vector<1x2x16xbf16> to vector<2x16xbf16>
    %cst_22 = arith.constant dense<0.000000e+00> : vector<2x128xf32>
    %40 = tpu.matmul %39, %3, %cst_22 {dimension_numbers = #tpu.dot_dimension_numbers<[1], [0], [0], [1], [0, 0, 1, 1], [], []>} : vector<2x16xbf16>, vector<16x128xbf16>, vector<2x128xf32> -> vector<2x128xf32>
    %41 = arith.truncf %33 : vector<2x32xf32> to vector<2x32xbf16>
    %cst_23 = arith.constant dense<0.000000e+00> : vector<2x128xf32>
    %42 = tpu.matmul %41, %5, %cst_23 {dimension_numbers = #tpu.dot_dimension_numbers<[1], [0], [0], [1], [0, 0, 1, 1], [], []>} : vector<2x32xbf16>, vector<32x128xbf16>, vector<2x128xf32> -> vector<2x128xf32>
    %43 = arith.addf %40, %42 : vector<2x128xf32>
    %44 = vector.broadcast %4 : vector<1x128xf32> to vector<2x128xf32>
    %45 = arith.addf %43, %44 : vector<2x128xf32>
    %46 = vector.extract_strided_slice %45 {offsets = [0, 0], sizes = [2, 96], strides = [1, 1]} : vector<2x128xf32> to vector<2x96xf32>
    %cst_24 = arith.constant 5.000000e-01 : f32
    %47 = vector.broadcast %cst_24 : f32 to vector<2x96xf32>
    %48 = arith.mulf %47, %46 : vector<2x96xf32>
    %49 = math.tanh %48 : vector<2x96xf32>
    %cst_25 = arith.constant 5.000000e-01 : f32
    %50 = vector.broadcast %cst_25 : f32 to vector<2x96xf32>
    %51 = arith.mulf %50, %49 : vector<2x96xf32>
    %cst_26 = arith.constant 5.000000e-01 : f32
    %52 = vector.broadcast %cst_26 : f32 to vector<2x96xf32>
    %53 = arith.addf %51, %52 : vector<2x96xf32>
    %54 = vector.extract_strided_slice %53 {offsets = [0, 0], sizes = [2, 32], strides = [1, 1]} : vector<2x96xf32> to vector<2x32xf32>
    %55 = vector.extract_strided_slice %53 {offsets = [0, 32], sizes = [2, 32], strides = [1, 1]} : vector<2x96xf32> to vector<2x32xf32>
    %56 = vector.extract_strided_slice %53 {offsets = [0, 64], sizes = [2, 32], strides = [1, 1]} : vector<2x96xf32> to vector<2x32xf32>
    %57 = vector.extract_strided_slice %45 {offsets = [0, 96], sizes = [2, 32], strides = [1, 1]} : vector<2x128xf32> to vector<2x32xf32>
    %58 = math.tanh %57 : vector<2x32xf32>
    %59 = arith.mulf %55, %31 : vector<2x32xf32>
    %60 = arith.mulf %54, %58 : vector<2x32xf32>
    %61 = arith.addf %59, %60 : vector<2x32xf32>
    %62 = math.tanh %61 : vector<2x32xf32>
    %63 = arith.mulf %56, %62 : vector<2x32xf32>
    %64 = arith.truncf %63 : vector<2x32xf32> to vector<2x32xbf16>
    %c1_27 = arith.constant 1 : index
    %c0_28 = arith.constant 0 : index
    %c0_29 = arith.constant 0 : index
    %65 = vector.load %arg6[%c1_27, %c0_28, %c0_29] : memref<8x2x32xbf16, #tpu.memory_space<vmem>>, vector<1x2x32xbf16>
    %66 = vector.shape_cast %65 : vector<1x2x32xbf16> to vector<2x32xbf16>
    %67 = vector.shape_cast %64 : vector<2x32xbf16> to vector<1x2x32xbf16>
    tpu.vector_store %arg6[%c1_27, %c0_28, %c0_29], %67 {strides = array<i32>} : memref<8x2x32xbf16, #tpu.memory_space<vmem>>, vector<1x2x32xbf16>,
    %c2 = arith.constant 2 : index
    %c0_30 = arith.constant 0 : index
    %c0_31 = arith.constant 0 : index
    %68 = vector.load %arg2[%c2, %c0_30, %c0_31] : memref<8x2x16xbf16, #tpu.memory_space<vmem>>, vector<1x2x16xbf16>
    %69 = vector.shape_cast %68 : vector<1x2x16xbf16> to vector<2x16xbf16>
    %cst_32 = arith.constant dense<0.000000e+00> : vector<2x128xf32>
    %70 = tpu.matmul %69, %3, %cst_32 {dimension_numbers = #tpu.dot_dimension_numbers<[1], [0], [0], [1], [0, 0, 1, 1], [], []>} : vector<2x16xbf16>, vector<16x128xbf16>, vector<2x128xf32> -> vector<2x128xf32>
    %71 = arith.truncf %63 : vector<2x32xf32> to vector<2x32xbf16>
    %cst_33 = arith.constant dense<0.000000e+00> : vector<2x128xf32>
    %72 = tpu.matmul %71, %5, %cst_33 {dimension_numbers = #tpu.dot_dimension_numbers<[1], [0], [0], [1], [0, 0, 1, 1], [], []>} : vector<2x32xbf16>, vector<32x128xbf16>, vector<2x128xf32> -> vector<2x128xf32>
    %73 = arith.addf %70, %72 : vector<2x128xf32>
    %74 = vector.broadcast %4 : vector<1x128xf32> to vector<2x128xf32>
    %75 = arith.addf %73, %74 : vector<2x128xf32>
    %76 = vector.extract_strided_slice %75 {offsets = [0, 0], sizes = [2, 96], strides = [1, 1]} : vector<2x128xf32> to vector<2x96xf32>
    %cst_34 = arith.constant 5.000000e-01 : f32
    %77 = vector.broadcast %cst_34 : f32 to vector<2x96xf32>
    %78 = arith.mulf %77, %76 : vector<2x96xf32>
    %79 = math.tanh %78 : vector<2x96xf32>
    %cst_35 = arith.constant 5.000000e-01 : f32
    %80 = vector.broadcast %cst_35 : f32 to vector<2x96xf32>
    %81 = arith.mulf %80, %79 : vector<2x96xf32>
    %cst_36 = arith.constant 5.000000e-01 : f32
    %82 = vector.broadcast %cst_36 : f32 to vector<2x96xf32>
    %83 = arith.addf %81, %82 : vector<2x96xf32>
    %84 = vector.extract_strided_slice %83 {offsets = [0, 0], sizes = [2, 32], strides = [1, 1]} : vector<2x96xf32> to vector<2x32xf32>
    %85 = vector.extract_strided_slice %83 {offsets = [0, 32], sizes = [2, 32], strides = [1, 1]} : vector<2x96xf32> to vector<2x32xf32>
    %86 = vector.extract_strided_slice %83 {offsets = [0, 64], sizes = [2, 32], strides = [1, 1]} : vector<2x96xf32> to vector<2x32xf32>
    %87 = vector.extract_strided_slice %75 {offsets = [0, 96], sizes = [2, 32], strides = [1, 1]} : vector<2x128xf32> to vector<2x32xf32>
    %88 = math.tanh %87 : vector<2x32xf32>
    %89 = arith.mulf %85, %61 : vector<2x32xf32>
    %90 = arith.mulf %84, %88 : vector<2x32xf32>
    %91 = arith.addf %89, %90 : vector<2x32xf32>
    %92 = math.tanh %91 : vector<2x32xf32>
    %93 = arith.mulf %86, %92 : vector<2x32xf32>
    %94 = arith.truncf %93 : vector<2x32xf32> to vector<2x32xbf16>
    %c2_37 = arith.constant 2 : index
    %c0_38 = arith.constant 0 : index
    %c0_39 = arith.constant 0 : index
    %95 = vector.load %arg6[%c2_37, %c0_38, %c0_39] : memref<8x2x32xbf16, #tpu.memory_space<vmem>>, vector<1x2x32xbf16>
    %96 = vector.shape_cast %95 : vector<1x2x32xbf16> to vector<2x32xbf16>
    %97 = vector.shape_cast %94 : vector<2x32xbf16> to vector<1x2x32xbf16>
    tpu.vector_store %arg6[%c2_37, %c0_38, %c0_39], %97 {strides = array<i32>} : memref<8x2x32xbf16, #tpu.memory_space<vmem>>, vector<1x2x32xbf16>,
    %c3 = arith.constant 3 : index
    %c0_40 = arith.constant 0 : index
    %c0_41 = arith.constant 0 : index
    %98 = vector.load %arg2[%c3, %c0_40, %c0_41] : memref<8x2x16xbf16, #tpu.memory_space<vmem>>, vector<1x2x16xbf16>
    %99 = vector.shape_cast %98 : vector<1x2x16xbf16> to vector<2x16xbf16>
    %cst_42 = arith.constant dense<0.000000e+00> : vector<2x128xf32>
    %100 = tpu.matmul %99, %3, %cst_42 {dimension_numbers = #tpu.dot_dimension_numbers<[1], [0], [0], [1], [0, 0, 1, 1], [], []>} : vector<2x16xbf16>, vector<16x128xbf16>, vector<2x128xf32> -> vector<2x128xf32>
    %101 = arith.truncf %93 : vector<2x32xf32> to vector<2x32xbf16>
    %cst_43 = arith.constant dense<0.000000e+00> : vector<2x128xf32>
    %102 = tpu.matmul %101, %5, %cst_43 {dimension_numbers = #tpu.dot_dimension_numbers<[1], [0], [0], [1], [0, 0, 1, 1], [], []>} : vector<2x32xbf16>, vector<32x128xbf16>, vector<2x128xf32> -> vector<2x128xf32>
    %103 = arith.addf %100, %102 : vector<2x128xf32>
    %104 = vector.broadcast %4 : vector<1x128xf32> to vector<2x128xf32>
    %105 = arith.addf %103, %104 : vector<2x128xf32>
    %106 = vector.extract_strided_slice %105 {offsets = [0, 0], sizes = [2, 96], strides = [1, 1]} : vector<2x128xf32> to vector<2x96xf32>
    %cst_44 = arith.constant 5.000000e-01 : f32
    %107 = vector.broadcast %cst_44 : f32 to vector<2x96xf32>
    %108 = arith.mulf %107, %106 : vector<2x96xf32>
    %109 = math.tanh %108 : vector<2x96xf32>
    %cst_45 = arith.constant 5.000000e-01 : f32
    %110 = vector.broadcast %cst_45 : f32 to vector<2x96xf32>
    %111 = arith.mulf %110, %109 : vector<2x96xf32>
    %cst_46 = arith.constant 5.000000e-01 : f32
    %112 = vector.broadcast %cst_46 : f32 to vector<2x96xf32>
    %113 = arith.addf %111, %112 : vector<2x96xf32>
    %114 = vector.extract_strided_slice %113 {offsets = [0, 0], sizes = [2, 32], strides = [1, 1]} : vector<2x96xf32> to vector<2x32xf32>
    %115 = vector.extract_strided_slice %113 {offsets = [0, 32], sizes = [2, 32], strides = [1, 1]} : vector<2x96xf32> to vector<2x32xf32>
    %116 = vector.extract_strided_slice %113 {offsets = [0, 64], sizes = [2, 32], strides = [1, 1]} : vector<2x96xf32> to vector<2x32xf32>
    %117 = vector.extract_strided_slice %105 {offsets = [0, 96], sizes = [2, 32], strides = [1, 1]} : vector<2x128xf32> to vector<2x32xf32>
    %118 = math.tanh %117 : vector<2x32xf32>
    %119 = arith.mulf %115, %91 : vector<2x32xf32>
    %120 = arith.mulf %114, %118 : vector<2x32xf32>
    %121 = arith.addf %119, %120 : vector<2x32xf32>
    %122 = math.tanh %121 : vector<2x32xf32>
    %123 = arith.mulf %116, %122 : vector<2x32xf32>
    %124 = arith.truncf %123 : vector<2x32xf32> to vector<2x32xbf16>
    %c3_47 = arith.constant 3 : index
    %c0_48 = arith.constant 0 : index
    %c0_49 = arith.constant 0 : index
    %125 = vector.load %arg6[%c3_47, %c0_48, %c0_49] : memref<8x2x32xbf16, #tpu.memory_space<vmem>>, vector<1x2x32xbf16>
    %126 = vector.shape_cast %125 : vector<1x2x32xbf16> to vector<2x32xbf16>
    %127 = vector.shape_cast %124 : vector<2x32xbf16> to vector<1x2x32xbf16>
    tpu.vector_store %arg6[%c3_47, %c0_48, %c0_49], %127 {strides = array<i32>} : memref<8x2x32xbf16, #tpu.memory_space<vmem>>, vector<1x2x32xbf16>,
    %c4 = arith.constant 4 : index
    %c0_50 = arith.constant 0 : index
    %c0_51 = arith.constant 0 : index
    %128 = vector.load %arg2[%c4, %c0_50, %c0_51] : memref<8x2x16xbf16, #tpu.memory_space<vmem>>, vector<1x2x16xbf16>
    %129 = vector.shape_cast %128 : vector<1x2x16xbf16> to vector<2x16xbf16>
    %cst_52 = arith.constant dense<0.000000e+00> : vector<2x128xf32>
    %130 = tpu.matmul %129, %3, %cst_52 {dimension_numbers = #tpu.dot_dimension_numbers<[1], [0], [0], [1], [0, 0, 1, 1], [], []>} : vector<2x16xbf16>, vector<16x128xbf16>, vector<2x128xf32> -> vector<2x128xf32>
    %131 = arith.truncf %123 : vector<2x32xf32> to vector<2x32xbf16>
    %cst_53 = arith.constant dense<0.000000e+00> : vector<2x128xf32>
    %132 = tpu.matmul %131, %5, %cst_53 {dimension_numbers = #tpu.dot_dimension_numbers<[1], [0], [0], [1], [0, 0, 1, 1], [], []>} : vector<2x32xbf16>, vector<32x128xbf16>, vector<2x128xf32> -> vector<2x128xf32>
    %133 = arith.addf %130, %132 : vector<2x128xf32>
    %134 = vector.broadcast %4 : vector<1x128xf32> to vector<2x128xf32>
    %135 = arith.addf %133, %134 : vector<2x128xf32>
    %136 = vector.extract_strided_slice %135 {offsets = [0, 0], sizes = [2, 96], strides = [1, 1]} : vector<2x128xf32> to vector<2x96xf32>
    %cst_54 = arith.constant 5.000000e-01 : f32
    %137 = vector.broadcast %cst_54 : f32 to vector<2x96xf32>
    %138 = arith.mulf %137, %136 : vector<2x96xf32>
    %139 = math.tanh %138 : vector<2x96xf32>
    %cst_55 = arith.constant 5.000000e-01 : f32
    %140 = vector.broadcast %cst_55 : f32 to vector<2x96xf32>
    %141 = arith.mulf %140, %139 : vector<2x96xf32>
    %cst_56 = arith.constant 5.000000e-01 : f32
    %142 = vector.broadcast %cst_56 : f32 to vector<2x96xf32>
    %143 = arith.addf %141, %142 : vector<2x96xf32>
    %144 = vector.extract_strided_slice %143 {offsets = [0, 0], sizes = [2, 32], strides = [1, 1]} : vector<2x96xf32> to vector<2x32xf32>
    %145 = vector.extract_strided_slice %143 {offsets = [0, 32], sizes = [2, 32], strides = [1, 1]} : vector<2x96xf32> to vector<2x32xf32>
    %146 = vector.extract_strided_slice %143 {offsets = [0, 64], sizes = [2, 32], strides = [1, 1]} : vector<2x96xf32> to vector<2x32xf32>
    %147 = vector.extract_strided_slice %135 {offsets = [0, 96], sizes = [2, 32], strides = [1, 1]} : vector<2x128xf32> to vector<2x32xf32>
    %148 = math.tanh %147 : vector<2x32xf32>
    %149 = arith.mulf %145, %121 : vector<2x32xf32>
    %150 = arith.mulf %144, %148 : vector<2x32xf32>
    %151 = arith.addf %149, %150 : vector<2x32xf32>
    %152 = math.tanh %151 : vector<2x32xf32>
    %153 = arith.mulf %146, %152 : vector<2x32xf32>
    %154 = arith.truncf %153 : vector<2x32xf32> to vector<2x32xbf16>
    %c4_57 = arith.constant 4 : index
    %c0_58 = arith.constant 0 : index
    %c0_59 = arith.constant 0 : index
    %155 = vector.load %arg6[%c4_57, %c0_58, %c0_59] : memref<8x2x32xbf16, #tpu.memory_space<vmem>>, vector<1x2x32xbf16>
    %156 = vector.shape_cast %155 : vector<1x2x32xbf16> to vector<2x32xbf16>
    %157 = vector.shape_cast %154 : vector<2x32xbf16> to vector<1x2x32xbf16>
    tpu.vector_store %arg6[%c4_57, %c0_58, %c0_59], %157 {strides = array<i32>} : memref<8x2x32xbf16, #tpu.memory_space<vmem>>, vector<1x2x32xbf16>,
    %c5 = arith.constant 5 : index
    %c0_60 = arith.constant 0 : index
    %c0_61 = arith.constant 0 : index
    %158 = vector.load %arg2[%c5, %c0_60, %c0_61] : memref<8x2x16xbf16, #tpu.memory_space<vmem>>, vector<1x2x16xbf16>
    %159 = vector.shape_cast %158 : vector<1x2x16xbf16> to vector<2x16xbf16>
    %cst_62 = arith.constant dense<0.000000e+00> : vector<2x128xf32>
    %160 = tpu.matmul %159, %3, %cst_62 {dimension_numbers = #tpu.dot_dimension_numbers<[1], [0], [0], [1], [0, 0, 1, 1], [], []>} : vector<2x16xbf16>, vector<16x128xbf16>, vector<2x128xf32> -> vector<2x128xf32>
    %161 = arith.truncf %153 : vector<2x32xf32> to vector<2x32xbf16>
    %cst_63 = arith.constant dense<0.000000e+00> : vector<2x128xf32>
    %162 = tpu.matmul %161, %5, %cst_63 {dimension_numbers = #tpu.dot_dimension_numbers<[1], [0], [0], [1], [0, 0, 1, 1], [], []>} : vector<2x32xbf16>, vector<32x128xbf16>, vector<2x128xf32> -> vector<2x128xf32>
    %163 = arith.addf %160, %162 : vector<2x128xf32>
    %164 = vector.broadcast %4 : vector<1x128xf32> to vector<2x128xf32>
    %165 = arith.addf %163, %164 : vector<2x128xf32>
    %166 = vector.extract_strided_slice %165 {offsets = [0, 0], sizes = [2, 96], strides = [1, 1]} : vector<2x128xf32> to vector<2x96xf32>
    %cst_64 = arith.constant 5.000000e-01 : f32
    %167 = vector.broadcast %cst_64 : f32 to vector<2x96xf32>
    %168 = arith.mulf %167, %166 : vector<2x96xf32>
    %169 = math.tanh %168 : vector<2x96xf32>
    %cst_65 = arith.constant 5.000000e-01 : f32
    %170 = vector.broadcast %cst_65 : f32 to vector<2x96xf32>
    %171 = arith.mulf %170, %169 : vector<2x96xf32>
    %cst_66 = arith.constant 5.000000e-01 : f32
    %172 = vector.broadcast %cst_66 : f32 to vector<2x96xf32>
    %173 = arith.addf %171, %172 : vector<2x96xf32>
    %174 = vector.extract_strided_slice %173 {offsets = [0, 0], sizes = [2, 32], strides = [1, 1]} : vector<2x96xf32> to vector<2x32xf32>
    %175 = vector.extract_strided_slice %173 {offsets = [0, 32], sizes = [2, 32], strides = [1, 1]} : vector<2x96xf32> to vector<2x32xf32>
    %176 = vector.extract_strided_slice %173 {offsets = [0, 64], sizes = [2, 32], strides = [1, 1]} : vector<2x96xf32> to vector<2x32xf32>
    %177 = vector.extract_strided_slice %165 {offsets = [0, 96], sizes = [2, 32], strides = [1, 1]} : vector<2x128xf32> to vector<2x32xf32>
    %178 = math.tanh %177 : vector<2x32xf32>
    %179 = arith.mulf %175, %151 : vector<2x32xf32>
    %180 = arith.mulf %174, %178 : vector<2x32xf32>
    %181 = arith.addf %179, %180 : vector<2x32xf32>
    %182 = math.tanh %181 : vector<2x32xf32>
    %183 = arith.mulf %176, %182 : vector<2x32xf32>
    %184 = arith.truncf %183 : vector<2x32xf32> to vector<2x32xbf16>
    %c5_67 = arith.constant 5 : index
    %c0_68 = arith.constant 0 : index
    %c0_69 = arith.constant 0 : index
    %185 = vector.load %arg6[%c5_67, %c0_68, %c0_69] : memref<8x2x32xbf16, #tpu.memory_space<vmem>>, vector<1x2x32xbf16>
    %186 = vector.shape_cast %185 : vector<1x2x32xbf16> to vector<2x32xbf16>
    %187 = vector.shape_cast %184 : vector<2x32xbf16> to vector<1x2x32xbf16>
    tpu.vector_store %arg6[%c5_67, %c0_68, %c0_69], %187 {strides = array<i32>} : memref<8x2x32xbf16, #tpu.memory_space<vmem>>, vector<1x2x32xbf16>,
    %c6 = arith.constant 6 : index
    %c0_70 = arith.constant 0 : index
    %c0_71 = arith.constant 0 : index
    %188 = vector.load %arg2[%c6, %c0_70, %c0_71] : memref<8x2x16xbf16, #tpu.memory_space<vmem>>, vector<1x2x16xbf16>
    %189 = vector.shape_cast %188 : vector<1x2x16xbf16> to vector<2x16xbf16>
    %cst_72 = arith.constant dense<0.000000e+00> : vector<2x128xf32>
    %190 = tpu.matmul %189, %3, %cst_72 {dimension_numbers = #tpu.dot_dimension_numbers<[1], [0], [0], [1], [0, 0, 1, 1], [], []>} : vector<2x16xbf16>, vector<16x128xbf16>, vector<2x128xf32> -> vector<2x128xf32>
    %191 = arith.truncf %183 : vector<2x32xf32> to vector<2x32xbf16>
    %cst_73 = arith.constant dense<0.000000e+00> : vector<2x128xf32>
    %192 = tpu.matmul %191, %5, %cst_73 {dimension_numbers = #tpu.dot_dimension_numbers<[1], [0], [0], [1], [0, 0, 1, 1], [], []>} : vector<2x32xbf16>, vector<32x128xbf16>, vector<2x128xf32> -> vector<2x128xf32>
    %193 = arith.addf %190, %192 : vector<2x128xf32>
    %194 = vector.broadcast %4 : vector<1x128xf32> to vector<2x128xf32>
    %195 = arith.addf %193, %194 : vector<2x128xf32>
    %196 = vector.extract_strided_slice %195 {offsets = [0, 0], sizes = [2, 96], strides = [1, 1]} : vector<2x128xf32> to vector<2x96xf32>
    %cst_74 = arith.constant 5.000000e-01 : f32
    %197 = vector.broadcast %cst_74 : f32 to vector<2x96xf32>
    %198 = arith.mulf %197, %196 : vector<2x96xf32>
    %199 = math.tanh %198 : vector<2x96xf32>
    %cst_75 = arith.constant 5.000000e-01 : f32
    %200 = vector.broadcast %cst_75 : f32 to vector<2x96xf32>
    %201 = arith.mulf %200, %199 : vector<2x96xf32>
    %cst_76 = arith.constant 5.000000e-01 : f32
    %202 = vector.broadcast %cst_76 : f32 to vector<2x96xf32>
    %203 = arith.addf %201, %202 : vector<2x96xf32>
    %204 = vector.extract_strided_slice %203 {offsets = [0, 0], sizes = [2, 32], strides = [1, 1]} : vector<2x96xf32> to vector<2x32xf32>
    %205 = vector.extract_strided_slice %203 {offsets = [0, 32], sizes = [2, 32], strides = [1, 1]} : vector<2x96xf32> to vector<2x32xf32>
    %206 = vector.extract_strided_slice %203 {offsets = [0, 64], sizes = [2, 32], strides = [1, 1]} : vector<2x96xf32> to vector<2x32xf32>
    %207 = vector.extract_strided_slice %195 {offsets = [0, 96], sizes = [2, 32], strides = [1, 1]} : vector<2x128xf32> to vector<2x32xf32>
    %208 = math.tanh %207 : vector<2x32xf32>
    %209 = arith.mulf %205, %181 : vector<2x32xf32>
    %210 = arith.mulf %204, %208 : vector<2x32xf32>
    %211 = arith.addf %209, %210 : vector<2x32xf32>
    %212 = math.tanh %211 : vector<2x32xf32>
    %213 = arith.mulf %206, %212 : vector<2x32xf32>
    %214 = arith.truncf %213 : vector<2x32xf32> to vector<2x32xbf16>
    %c6_77 = arith.constant 6 : index
    %c0_78 = arith.constant 0 : index
    %c0_79 = arith.constant 0 : index
    %215 = vector.load %arg6[%c6_77, %c0_78, %c0_79] : memref<8x2x32xbf16, #tpu.memory_space<vmem>>, vector<1x2x32xbf16>
    %216 = vector.shape_cast %215 : vector<1x2x32xbf16> to vector<2x32xbf16>
    %217 = vector.shape_cast %214 : vector<2x32xbf16> to vector<1x2x32xbf16>
    tpu.vector_store %arg6[%c6_77, %c0_78, %c0_79], %217 {strides = array<i32>} : memref<8x2x32xbf16, #tpu.memory_space<vmem>>, vector<1x2x32xbf16>,
    %c7 = arith.constant 7 : index
    %c0_80 = arith.constant 0 : index
    %c0_81 = arith.constant 0 : index
    %218 = vector.load %arg2[%c7, %c0_80, %c0_81] : memref<8x2x16xbf16, #tpu.memory_space<vmem>>, vector<1x2x16xbf16>
    %219 = vector.shape_cast %218 : vector<1x2x16xbf16> to vector<2x16xbf16>
    %cst_82 = arith.constant dense<0.000000e+00> : vector<2x128xf32>
    %220 = tpu.matmul %219, %3, %cst_82 {dimension_numbers = #tpu.dot_dimension_numbers<[1], [0], [0], [1], [0, 0, 1, 1], [], []>} : vector<2x16xbf16>, vector<16x128xbf16>, vector<2x128xf32> -> vector<2x128xf32>
    %221 = arith.truncf %213 : vector<2x32xf32> to vector<2x32xbf16>
    %cst_83 = arith.constant dense<0.000000e+00> : vector<2x128xf32>
    %222 = tpu.matmul %221, %5, %cst_83 {dimension_numbers = #tpu.dot_dimension_numbers<[1], [0], [0], [1], [0, 0, 1, 1], [], []>} : vector<2x32xbf16>, vector<32x128xbf16>, vector<2x128xf32> -> vector<2x128xf32>
    %223 = arith.addf %220, %222 : vector<2x128xf32>
    %224 = vector.broadcast %4 : vector<1x128xf32> to vector<2x128xf32>
    %225 = arith.addf %223, %224 : vector<2x128xf32>
    %226 = vector.extract_strided_slice %225 {offsets = [0, 0], sizes = [2, 96], strides = [1, 1]} : vector<2x128xf32> to vector<2x96xf32>
    %cst_84 = arith.constant 5.000000e-01 : f32
    %227 = vector.broadcast %cst_84 : f32 to vector<2x96xf32>
    %228 = arith.mulf %227, %226 : vector<2x96xf32>
    %229 = math.tanh %228 : vector<2x96xf32>
    %cst_85 = arith.constant 5.000000e-01 : f32
    %230 = vector.broadcast %cst_85 : f32 to vector<2x96xf32>
    %231 = arith.mulf %230, %229 : vector<2x96xf32>
    %cst_86 = arith.constant 5.000000e-01 : f32
    %232 = vector.broadcast %cst_86 : f32 to vector<2x96xf32>
    %233 = arith.addf %231, %232 : vector<2x96xf32>
    %234 = vector.extract_strided_slice %233 {offsets = [0, 0], sizes = [2, 32], strides = [1, 1]} : vector<2x96xf32> to vector<2x32xf32>
    %235 = vector.extract_strided_slice %233 {offsets = [0, 32], sizes = [2, 32], strides = [1, 1]} : vector<2x96xf32> to vector<2x32xf32>
    %236 = vector.extract_strided_slice %233 {offsets = [0, 64], sizes = [2, 32], strides = [1, 1]} : vector<2x96xf32> to vector<2x32xf32>
    %237 = vector.extract_strided_slice %225 {offsets = [0, 96], sizes = [2, 32], strides = [1, 1]} : vector<2x128xf32> to vector<2x32xf32>
    %238 = math.tanh %237 : vector<2x32xf32>
    %239 = arith.mulf %235, %211 : vector<2x32xf32>
    %240 = arith.mulf %234, %238 : vector<2x32xf32>
    %241 = arith.addf %239, %240 : vector<2x32xf32>
    %242 = math.tanh %241 : vector<2x32xf32>
    %243 = arith.mulf %236, %242 : vector<2x32xf32>
    %244 = arith.truncf %243 : vector<2x32xf32> to vector<2x32xbf16>
    %c7_87 = arith.constant 7 : index
    %c0_88 = arith.constant 0 : index
    %c0_89 = arith.constant 0 : index
    %245 = vector.load %arg6[%c7_87, %c0_88, %c0_89] : memref<8x2x32xbf16, #tpu.memory_space<vmem>>, vector<1x2x32xbf16>
    %246 = vector.shape_cast %245 : vector<1x2x32xbf16> to vector<2x32xbf16>
    %247 = vector.shape_cast %244 : vector<2x32xbf16> to vector<1x2x32xbf16>
    tpu.vector_store %arg6[%c7_87, %c0_88, %c0_89], %247 {strides = array<i32>} : memref<8x2x32xbf16, #tpu.memory_space<vmem>>, vector<1x2x32xbf16>,
    %c0_90 = arith.constant 0 : index
    %c0_91 = arith.constant 0 : index
    %248 = vector.load %arg7[%c0_90, %c0_91] : memref<2x32xf32, #tpu.memory_space<vmem>>, vector<2x32xf32>
    tpu.vector_store %arg7[%c0_90, %c0_91], %243 {strides = array<i32>} : memref<2x32xf32, #tpu.memory_space<vmem>>, vector<2x32xf32>,
    %c0_92 = arith.constant 0 : index
    %c0_93 = arith.constant 0 : index
    %249 = vector.load %arg8[%c0_92, %c0_93] : memref<2x32xf32, #tpu.memory_space<vmem>>, vector<2x32xf32>
    tpu.vector_store %arg8[%c0_92, %c0_93], %241 {strides = array<i32>} : memref<2x32xf32, #tpu.memory_space<vmem>>, vector<2x32xf32>,
    return
  }
  func.func @transform_0(%arg0: i32, %arg1: i32) -> (i32, i32, i32) {
    %c0_i32 = arith.constant 0 : i32
    %c0_i32_0 = arith.constant 0 : i32
    return %arg1, %arg0, %c0_i32 : i32, i32, i32
  }
  func.func @transform_1(%arg0: i32, %arg1: i32) -> (i32, i32) {
    %c0_i32 = arith.constant 0 : i32
    %c0_i32_0 = arith.constant 0 : i32
    %c0_i32_1 = arith.constant 0 : i32
    return %c0_i32, %c0_i32_0 : i32, i32
  }
  func.func @transform_2(%arg0: i32, %arg1: i32) -> (i32, i32) {
    %c0_i32 = arith.constant 0 : i32
    %c0_i32_0 = arith.constant 0 : i32
    %c0_i32_1 = arith.constant 0 : i32
    return %c0_i32, %c0_i32_0 : i32, i32
  }
  func.func @transform_3(%arg0: i32, %arg1: i32) -> (i32, i32) {
    %c0_i32 = arith.constant 0 : i32
    %c0_i32_0 = arith.constant 0 : i32
    %c0_i32_1 = arith.constant 0 : i32
    return %c0_i32, %c0_i32_0 : i32, i32
  }
  func.func @transform_4(%arg0: i32, %arg1: i32) -> (i32, i32, i32) {
    %c0_i32 = arith.constant 0 : i32
    %c0_i32_0 = arith.constant 0 : i32
    return %arg1, %arg0, %c0_i32 : i32, i32, i32
  }
}

</mosaic_0001>

<bundles_post_ra>
// kernel: tpu_custom_call.1
= control target key start
LH: loop header
LB: loop body
LE: loop exit
PB: predicated region body
PF: predicated region fallthrough
CT: control target
= control target key end

     0   :  { %9 = vsyncpa [#allocation5], 0  ;;  %s1781_s0 = inlined_call_operand.hbm [shape: bf16[8,2,16], index: 0, kind: input, shape index: {}]   ;;  %s1782_s1 = inlined_call_operand.hbm [shape: bf16[16,128], index: 1, kind: input, shape index: {}]   ;;  %s1783_s2 = inlined_call_operand.vmem [shape: f32[1,128], index: 2, kind: input, shape index: {}]   ;;  %s1784_s3 = inlined_call_operand.hbm [shape: bf16[32,128], index: 3, kind: input, shape index: {}]   ;;  %s1785_s4 = inlined_call_operand.hbm [shape: bf16[8,2,32], index: 4, kind: output, shape index: {}]  }
   0x1   :  { %10 = vsyncpa [#allocation8], 0 }
   0x2   :  { %11 = vsyncpa [#allocation6], 0  ;;  %s1527_s15 = smov [#allocation7]  }
   0x3   :  { %s29_s16 = sshll.u32 %s1527_s15, 4  ;;  %s30_s16 = int_to_ptr.vmem [resolvable:$true] %s29_s16 }
   0x4   :  { %s1449_s17 = scalar_lea.vmem %s30_s16, 128  ;;  %p1454_p1 = scmp.lt.s32.totalorder %s30_s16, %s30_s16 }
   0x5   :  { %p1450_p0 = scmp.ne.s32.totalorder %s30_s16, %s1449_s17  ;;  %p1455_p2 = scmp.lt.s32.totalorder %s1449_s17, %s1449_s17 }
   0x7   :  { %p1456_p3 = por %p1455_p2, %p1454_p1 }
   0x9   :  { %p1457_p4 = pnand %p1456_p3, %p1450_p0 }
   0xb   :  { %1460 = shalt.err (!%p1457_p4)
}
   0xc   :  { %s1528_s18 = smov 64   ;;  %s1529_s19 = smov 4  }
   0xd   :  { %35 = dma.hbm_to_vmem [thread:$0]  %s1782_s1, 128, %s30_s16, [#allocation8], %s1528_s18, %s1528_s18, %s1529_s19  }
   0xe   :  { %s1530_s22 = smov [#allocation4]  }
   0xf   :  { %s17_s23 = sshll.u32 %s1530_s22, 4  ;;  %s18_s23 = int_to_ptr.vmem [resolvable:$true] %s17_s23 }
  0x10   :  { %s1469_s24 = scalar_lea.vmem %s18_s23, 128  ;;  %p1474_p6 = scmp.lt.s32.totalorder %s18_s23, %s18_s23 }
  0x11   :  { %p1470_p5 = scmp.ne.s32.totalorder %s18_s23, %s1469_s24  ;;  %p1475_p7 = scmp.lt.s32.totalorder %s1469_s24, %s1469_s24 }
  0x13   :  { %p1476_p8 = por %p1475_p7, %p1474_p6 }
  0x15   :  { %p1477_p9 = pnand %p1476_p8, %p1470_p5 }
  0x17   :  { %1480 = shalt.err (!%p1477_p9)
}
  0x18   :  { %s1531_s25 = smov 16   ;;  %s1532_s26 = smov 1  }
  0x19   :  { %23 = dma.hbm_to_vmem [thread:$0]  %s1781_s0, 128, %s18_s23, [#allocation5], %s1531_s25, %s1531_s25, %s1532_s26  }
  0x1a   :  { %s1533_s1 = smov [#allocation9]  }
  0x1b   :  { %s43_s29 = sshll.u32 %s1533_s1, 4  ;;  %s44_s29 = int_to_ptr.vmem [resolvable:$true] %s43_s29 }
  0x1c   :  { %s1489_s30 = scalar_lea.vmem %s44_s29, 256  ;;  %p1494_p11 = scmp.lt.s32.totalorder %s44_s29, %s44_s29 }
  0x1d   :  { %p1490_p10 = scmp.ne.s32.totalorder %s44_s29, %s1489_s30  ;;  %p1495_p12 = scmp.lt.s32.totalorder %s1489_s30, %s1489_s30 }
  0x1f   :  { %p1496_p13 = por %p1495_p12, %p1494_p11 }
  0x21   :  { %p1497_p0 = pnand %p1496_p13, %p1490_p10 }
  0x23   :  { %1500 = shalt.err (!%p1497_p0)
}
  0x24   :  { %49 = dma.hbm_to_vmem [thread:$0]  %s1784_s3, 256, %s44_s29, [#allocation8], %s1528_s18, %s1528_s18, %s1529_s19  }
  0x25   :  { %1521 = dma.done.wait [#allocation5], 128  }
  0x26   :  { %1522 = vsyncadd [#allocation5], 4294967168 }
  0x27   :  { %1523 = dma.done.wait [#allocation8], 384  }
  0x28   :  { %1524 = vsyncadd [#allocation8], 4294966912  ;;  %vm64_vm0 = vcmask 254976   ;;  %v1534_v0 = vmov 0.0   ;;  %vm1535_vm1 = vmmov 0   ;;  %v1591_v1 = vld [vmem:[#allocation9 + $0x8] sm:$0xff]  }
  0x29   :  { %1265 = vmatprep.subr.bf16.mxu0 %v1534_v0  ;;  %1273 = vmatprep.subr.bf16.mxu1 %v1534_v0  ;;  %65 = vst.msk [vmem:[#allocation2] sm:$0x3] %vm64_vm0, %v1534_v0  ;;  %66 = vst.msk [vmem:[#allocation3] sm:$0x3] %vm64_vm0, %v1534_v0  ;;  %v1593_v2 = vld [vmem:[#allocation7] sm:$0xff]   ;;  %vm140_vm2 = vcmask 130048  }
  0x2a   :  { %1275 = vmatprep.mubr.msk.bf16.mxu1 %vm1535_vm1, %v1534_v0  ;;  %1269 = vmatprep.mubr.msk.bf16.mxu0 %vm1535_vm1, %v1534_v0  ;;  %v76_v3 = vld [vmem:[#allocation4] sm:$0x1]  ;;  %v1598_v4 = vld [vmem:[#allocation9] sm:$0xff]   ;;  %vm90_vm3 = vcmask 261120   ;;  %v1618_v9 = vld [vmem:[%s1783_s2] ss:$0 sm:$0xff] }
  0x2b   :  { %1266 = vmatpush3.bf16.msra.mxu0 %v1591_v1  ;;  %1274 = vmatpush3.bf16.msra.mxu1 %v1593_v2  ;;  %s1536_s7 = smov 32   ;;  %v239_v30 = vld [vmem:[#allocation4 + $0x1] sm:$0x1]  ;;  %v373_v56 = vld [vmem:[#allocation4 + $0x2] sm:$0x1]  ;;  %vm236_vm4 = vcmask 253952  }
  0x2c   :  { %1267 = vmatprep.subr.bf16.mxu0 %v1534_v0  ;;  %1279 = vmatprep.subr.bf16.mxu1 %v1534_v0  ;;  %s1538_s2 = smov 96   ;;  %s1539_s8 = smov [#allocation10]  }
  0x2d   :  { %s1192_s9 = sshll.u32 %s1539_s8, 4  ;;  %s1193_s9 = int_to_ptr.vmem [resolvable:$true] %s1192_s9 }
  0x2e   :  { %1276 = vmatmul.mubr.msk.bf16.vlgmr.msra.gmra.mxu1 %vm140_vm2, %v76_v3  ;;  %s1501_s10 = scalar_lea.vmem %s1193_s9, 128  ;;  %p1506_p2 = scmp.lt.s32.totalorder %s1193_s9, %s1193_s9 }
  0x2f   :  { %1268 = vmatpush3.bf16.msra.mxu0 %v1598_v4  ;;  %1280 = vmatpush3.bf16.msra.mxu1 %v1591_v1  ;;  %p1502_p1 = scmp.ne.s32.totalorder %s1193_s9, %s1501_s10  ;;  %p1507_p3 = scmp.lt.s32.totalorder %s1501_s10, %s1501_s10 }
  0x30   :  { %v74_v5 = vld [vmem:[#allocation2] sm:$0x3]  ;;  %1287 = vmatprep.subr.bf16.mxu0 %v1534_v0  ;;  %1281 = vmatprep.subr.bf16.mxu1 %v1534_v0  ;;  %v75_v19 = vld [vmem:[#allocation3] sm:$0x3] }
  0x31   :  { %v77_v6 = vpack.c.bf16 %v74_v5, %v74_v5  ;;  %1283 = vmatprep.mubr.msk.bf16.mxu1 %vm1535_vm1, %v1534_v0  ;;  %p1508_p4 = por %p1507_p3, %p1506_p2 }
  0x33   :  { %1270 = vmatmul.mubr.msk.bf16.vlgmr.msra.gmra.mxu0 %vm90_vm3, %v77_v6  ;;  %1282 = vmatpush3.bf16.msra.mxu1 %v1598_v4  ;;  %p1509_p5 = pnand %p1508_p4, %p1502_p1 }
  0x34   :  { %1288 = vmatpush3.bf16.msra.mxu0 %v1593_v2  ;;  %1289 = vmatprep.mubr.msk.bf16.mxu0 %vm1535_vm1, %v1534_v0 }
  0x35   :  { %1301 = vmatprep.subr.bf16.mxu0 %v1534_v0  ;;  %1293 = vmatprep.subr.bf16.mxu1 %v1534_v0 }
  0x3b   :  { %1290 = vmatmul.mubr.msk.bf16.vlgmr.msra.gmra.mxu0 %vm140_vm2, %v239_v30 }
  0x3c   :  { %1302 = vmatpush3.bf16.msra.mxu0 %v1593_v2  ;;  %1303 = vmatprep.mubr.msk.bf16.mxu0 %vm1535_vm1, %v1534_v0 }
  0x3d   :  { %1315 = vmatprep.subr.bf16.mxu0 %v1534_v0 }
  0x43   :  { %1304 = vmatmul.mubr.msk.bf16.vlgmr.msra.gmra.mxu0 %vm140_vm2, %v373_v56 }
  0x44   :  { %1316 = vmatpush3.bf16.msra.mxu0 %v1593_v2  ;;  %1317 = vmatprep.mubr.msk.bf16.mxu0 %vm1535_vm1, %v1534_v0 }
  0x45   :  { %1329 = vmatprep.subr.bf16.mxu0 %v1534_v0 }
  0xee   :  { %v178_v7 = vpop.f32.mrf.mxu1 }
  0xf0   :  { %v1277_v8 = vpop.f32.mrf.mxu1 }
  0xf2   :  { %v181_v12 = vpop.f32.mrf.mxu1 }
  0xf3   :  { %v128_v10 = vpop.f32.mrf.mxu0 }
  0xf4   :  { %v179_v11 = vadd.f32 %v178_v7, %v128_v10  ;;  %v1278_v15 = vpop.f32.mrf.mxu1 }
  0xf5   :  { %v1271_v13 = vpop.f32.mrf.mxu0 }
  0xf6   :  { %v190_v14 = vadd.f32 %v1618_v9, %v179_v11 }
  0xf7   :  { %v131_v16 = vpop.f32.mrf.mxu0 }
  0xf8   :  { %1393 = vtanh.f32 %v190_v14  ;;  %v191_v20 = vmul.f32 0.5, %v190_v14 }
  0xf9   :  { %v1272_v17 = vpop.f32.mrf.mxu0 }
  0xfa   :  { %1395 = vtanh.f32 %v191_v20 }
  0xfb   :  { %v322_v35 = vpop.f32.mrf.mxu0 }
  0xfd   :  { %v1291_v36 = vpop.f32.mrf.mxu0 }
  0xff   :  { %v325_v37 = vpop.f32.mrf.mxu0 }
 0x101   :  { %v1292_v38 = vpop.f32.mrf.mxu0 }
 0x103   :  { %v456_v61 = vpop.f32.mrf.mxu0 }
 0x105   :  { %v1394_v18 = vpop.eup %1393  ;;  %v1305_v62 = vpop.f32.mrf.mxu0 }
 0x106   :  { %202 = vrot.lane.b32.xlu0 %v1394_v18, %s1536_s7 }
 0x107   :  { %v1396_v21 = vpop.eup %1395  ;;  %v459_v63 = vpop.f32.mrf.mxu0 }
 0x108   :  { %v193_v22 = vmul.f32 0.5, %v1396_v21 }
 0x109   :  { %v1306_v3 = vpop.f32.mrf.mxu0 }
 0x10a   :  { %197 = vrot.lane.b32.xlu0 %v75_v19, %s1536_s7  ;;  %v194_v23 = vadd.f32 0.5, %v193_v22 }
 0x178   :  { %v203_v24 = vpop.permute.xlu0 %202 }
 0x179   :  { %v205_v25 = vmul.f32 %v203_v24, %v194_v23 }
 0x17b   :  { %207 = vrot.lane.b32.xlu1 %v205_v25, %s1536_s7 }
 0x17c   :  { %v198_v26 = vpop.permute.xlu0 %197 }
 0x17d   :  { %v200_v27 = vmul.f32 %v198_v26, %v194_v23 }
 0x1ed   :  { %v208_v28 = vpop.permute.xlu1 %207 }
 0x1ee   :  { %v210_v29 = vadd.f32 %v208_v28, %v200_v27 }
 0x1f0   :  { %1397 = vtanh.f32 %v210_v29 }
 0x1fd   :  { %v1398_v31 = vpop.eup %1397 }
 0x1fe   :  { %213 = vrot.lane.b32.xlu1 %v1398_v31, %s1536_s7 }
 0x270   :  { %v214_v32 = vpop.permute.xlu1 %213 }
 0x271   :  { %v216_v33 = vmul.f32 %v214_v32, %v194_v23  ;;  %v507_v23 = vld [vmem:[#allocation4 + $0x3] sm:$0x1] }
 0x272   :  { %1318 = vmatmul.mubr.msk.bf16.vlgmr.msra.gmra.mxu0 %vm140_vm2, %v507_v23 }
 0x273   :  { %v1630_v34 = vpack.c.bf16 %v216_v33, %v216_v33  ;;  %1330 = vmatpush3.bf16.msra.mxu0 %v1593_v2  ;;  %1331 = vmatprep.mubr.msk.bf16.mxu0 %vm1535_vm1, %v1534_v0 }
 0x274   :  { %1343 = vmatprep.subr.bf16.mxu0 %v1534_v0 }
 0x275   :  { %240 = vrot.lane.b32.xlu0 %v1630_v34, %s1528_s18 }
 0x2e7   :  { %v241_v39 = vpop.permute.xlu0 %240 }
 0x2e8   :  { %1284 = vmatmul.mubr.msk.bf16.vlgmr.msra.gmra.mxu1 %vm90_vm3, %v241_v39 }
 0x2e9   :  { %1294 = vmatpush3.bf16.msra.mxu1 %v1591_v1  ;;  %1297 = vmatprep.mubr.msk.bf16.mxu1 %vm1535_vm1, %v1534_v0 }
 0x2ea   :  { %1295 = vmatprep.subr.bf16.mxu1 %v1534_v0 }
 0x2ed   :  { %1296 = vmatpush3.bf16.msra.mxu1 %v1598_v4 }
 0x2ee   :  { %1307 = vmatprep.subr.bf16.mxu1 %v1534_v0 }
 0x332   :  { %v590_v28 = vpop.f32.mrf.mxu0 }
 0x3a8   :  { %v279_v40 = vpop.f32.mrf.mxu1 }
 0x3a9   :  { %v323_v41 = vadd.f32 %v322_v35, %v279_v40 }
 0x3aa   :  { %v1285_v42 = vpop.f32.mrf.mxu1 }
 0x3ab   :  { %v328_v43 = vadd.f32 %v1618_v9, %v323_v41 }
 0x3ac   :  { %v282_v44 = vpop.f32.mrf.mxu1 }
 0x3ad   :  { %1399 = vtanh.f32 %v328_v43  ;;  %v329_v47 = vmul.f32 0.5, %v328_v43 }
 0x3ae   :  { %v1286_v45 = vpop.f32.mrf.mxu1 }
 0x3af   :  { %1401 = vtanh.f32 %v329_v47 }
 0x3ba   :  { %v1400_v46 = vpop.eup %1399 }
 0x3bb   :  { %336 = vrot.lane.b32.xlu1 %v1400_v46, %s1536_s7 }
 0x3bc   :  { %v1402_v48 = vpop.eup %1401 }
 0x3bd   :  { %v331_v49 = vmul.f32 0.5, %v1402_v48 }
 0x3bf   :  { %v332_v50 = vadd.f32 0.5, %v331_v49 }
 0x3c1   :  { %v334_v53 = vmul.f32 %v332_v50, %v210_v29  ;;  %v1319_v29 = vpop.f32.mrf.mxu0 }
 0x3c3   :  { %v593_v30 = vpop.f32.mrf.mxu0 }
 0x3c5   :  { %v1320_v31 = vpop.f32.mrf.mxu0 }
 0x42d   :  { %v337_v51 = vpop.permute.xlu1 %336 }
 0x42e   :  { %v339_v52 = vmul.f32 %v337_v51, %v332_v50 }
 0x430   :  { %341 = vrot.lane.b32.xlu0 %v339_v52, %s1536_s7 }
 0x4a2   :  { %v342_v54 = vpop.permute.xlu0 %341 }
 0x4a3   :  { %v344_v55 = vadd.f32 %v342_v54, %v334_v53 }
 0x4a5   :  { %1403 = vtanh.f32 %v344_v55 }
 0x4b2   :  { %v1404_v57 = vpop.eup %1403 }
 0x4b3   :  { %347 = vrot.lane.b32.xlu1 %v1404_v57, %s1536_s7 }
 0x525   :  { %v348_v58 = vpop.permute.xlu1 %347 }
 0x526   :  { %v350_v59 = vmul.f32 %v348_v58, %v332_v50  ;;  %v641_v50 = vld [vmem:[#allocation4 + $0x4] sm:$0x1] }
 0x527   :  { %1332 = vmatmul.mubr.msk.bf16.vlgmr.msra.gmra.mxu0 %vm140_vm2, %v641_v50 }
 0x528   :  { %v1650_v60 = vpack.c.bf16 %v350_v59, %v350_v59  ;;  %1344 = vmatpush3.bf16.msra.mxu0 %v1593_v2  ;;  %1345 = vmatprep.mubr.msk.bf16.mxu0 %vm1535_vm1, %v1534_v0 }
 0x529   :  { %1357 = vmatprep.subr.bf16.mxu0 %v1534_v0 }
 0x52a   :  { %374 = vrot.lane.b32.xlu0 %v1650_v60, %s1528_s18 }
 0x59c   :  { %v375_v5 = vpop.permute.xlu0 %374 }
 0x59d   :  { %1298 = vmatmul.mubr.msk.bf16.vlgmr.msra.gmra.mxu1 %vm90_vm3, %v375_v5 }
 0x59e   :  { %1308 = vmatpush3.bf16.msra.mxu1 %v1591_v1  ;;  %1311 = vmatprep.mubr.msk.bf16.mxu1 %vm1535_vm1, %v1534_v0 }
 0x59f   :  { %1309 = vmatprep.subr.bf16.mxu1 %v1534_v0 }
 0x5a2   :  { %1310 = vmatpush3.bf16.msra.mxu1 %v1598_v4 }
 0x5a3   :  { %1321 = vmatprep.subr.bf16.mxu1 %v1534_v0 }
 0x65d   :  { %v413_v6 = vpop.f32.mrf.mxu1 }
 0x65e   :  { %v457_v7 = vadd.f32 %v456_v61, %v413_v6 }
 0x65f   :  { %v1299_v8 = vpop.f32.mrf.mxu1 }
 0x660   :  { %v462_v10 = vadd.f32 %v1618_v9, %v457_v7 }
 0x661   :  { %v416_v11 = vpop.f32.mrf.mxu1 }
 0x662   :  { %1405 = vtanh.f32 %v462_v10  ;;  %v463_v14 = vmul.f32 0.5, %v462_v10 }
 0x663   :  { %v1300_v12 = vpop.f32.mrf.mxu1 }
 0x664   :  { %1407 = vtanh.f32 %v463_v14 }
 0x66f   :  { %v1406_v13 = vpop.eup %1405 }
 0x670   :  { %470 = vrot.lane.b32.xlu1 %v1406_v13, %s1536_s7 }
 0x671   :  { %v1408_v15 = vpop.eup %1407 }
 0x672   :  { %v465_v16 = vmul.f32 0.5, %v1408_v15 }
 0x674   :  { %v466_v17 = vadd.f32 0.5, %v465_v16 }
 0x676   :  { %v468_v20 = vmul.f32 %v466_v17, %v344_v55  ;;  %v724_v55 = vpop.f32.mrf.mxu0 }
 0x678   :  { %v1333_v56 = vpop.f32.mrf.mxu0 }
 0x67a   :  { %v727_v57 = vpop.f32.mrf.mxu0 }
 0x67c   :  { %v1334_v58 = vpop.f32.mrf.mxu0 }
 0x6e2   :  { %v471_v18 = vpop.permute.xlu1 %470 }
 0x6e3   :  { %v473_v19 = vmul.f32 %v471_v18, %v466_v17  ;;  %v775_v18 = vld [vmem:[#allocation4 + $0x5] sm:$0x1] }
 0x6e4   :  { %1346 = vmatmul.mubr.msk.bf16.vlgmr.msra.gmra.mxu0 %vm140_vm2, %v775_v18 }
 0x6e5   :  { %475 = vrot.lane.b32.xlu0 %v473_v19, %s1536_s7  ;;  %1358 = vmatpush3.bf16.msra.mxu0 %v1593_v2 }
 0x6e6   :  { %1359 = vmatprep.mubr.msk.bf16.mxu0 %vm1535_vm1, %v1534_v0  ;;  %1371 = vmatprep.subr.bf16.mxu0 %v1534_v0 }
 0x757   :  { %v476_v21 = vpop.permute.xlu0 %475 }
 0x758   :  { %v478_v22 = vadd.f32 %v476_v21, %v468_v20 }
 0x75a   :  { %1409 = vtanh.f32 %v478_v22 }
 0x767   :  { %v1410_v24 = vpop.eup %1409 }
 0x768   :  { %481 = vrot.lane.b32.xlu1 %v1410_v24, %s1536_s7 }
 0x7a4   :  { %v858_v23 = vpop.f32.mrf.mxu0 }
 0x7a6   :  { %v1347_v24 = vpop.f32.mrf.mxu0 }
 0x7da   :  { %v482_v25 = vpop.permute.xlu1 %481 }
 0x7db   :  { %v484_v26 = vmul.f32 %v482_v25, %v466_v17  ;;  %v861_v25 = vpop.f32.mrf.mxu0 }
 0x7dd   :  { %v1670_v27 = vpack.c.bf16 %v484_v26, %v484_v26  ;;  %v1348_v26 = vpop.f32.mrf.mxu0 }
 0x7df   :  { %508 = vrot.lane.b32.xlu0 %v1670_v27, %s1528_s18 }
 0x851   :  { %v509_v32 = vpop.permute.xlu0 %508 }
 0x852   :  { %1312 = vmatmul.mubr.msk.bf16.vlgmr.msra.gmra.mxu1 %vm90_vm3, %v509_v32 }
 0x853   :  { %1322 = vmatpush3.bf16.msra.mxu1 %v1591_v1  ;;  %1325 = vmatprep.mubr.msk.bf16.mxu1 %vm1535_vm1, %v1534_v0 }
 0x854   :  { %1323 = vmatprep.subr.bf16.mxu1 %v1534_v0 }
 0x857   :  { %1324 = vmatpush3.bf16.msra.mxu1 %v1598_v4 }
 0x858   :  { %1335 = vmatprep.subr.bf16.mxu1 %v1534_v0 }
 0x912   :  { %v547_v33 = vpop.f32.mrf.mxu1 }
 0x913   :  { %v591_v35 = vadd.f32 %v590_v28, %v547_v33 }
 0x914   :  { %v1313_v36 = vpop.f32.mrf.mxu1 }
 0x915   :  { %v596_v37 = vadd.f32 %v1618_v9, %v591_v35 }
 0x916   :  { %v550_v38 = vpop.f32.mrf.mxu1 }
 0x917   :  { %1411 = vtanh.f32 %v596_v37  ;;  %v597_v41 = vmul.f32 0.5, %v596_v37 }
 0x918   :  { %v1314_v39 = vpop.f32.mrf.mxu1 }
 0x919   :  { %1413 = vtanh.f32 %v597_v41 }
 0x924   :  { %v1412_v40 = vpop.eup %1411 }
 0x925   :  { %604 = vrot.lane.b32.xlu1 %v1412_v40, %s1536_s7 }
 0x926   :  { %v1414_v42 = vpop.eup %1413 }
 0x927   :  { %v599_v43 = vmul.f32 0.5, %v1414_v42 }
 0x929   :  { %v600_v44 = vadd.f32 0.5, %v599_v43 }
 0x92b   :  { %v602_v47 = vmul.f32 %v600_v44, %v478_v22 }
 0x997   :  { %v605_v45 = vpop.permute.xlu1 %604 }
 0x998   :  { %v607_v46 = vmul.f32 %v605_v45, %v600_v44 }
 0x99a   :  { %609 = vrot.lane.b32.xlu0 %v607_v46, %s1536_s7  ;;  %v909_v46 = vld [vmem:[#allocation4 + $0x6] sm:$0x1] }
 0x99b   :  { %1360 = vmatmul.mubr.msk.bf16.vlgmr.msra.gmra.mxu0 %vm140_vm2, %v909_v46 }
 0x99c   :  { %1372 = vmatpush3.bf16.msra.mxu0 %v1593_v2  ;;  %1373 = vmatprep.mubr.msk.bf16.mxu0 %vm1535_vm1, %v1534_v0 }
 0xa0c   :  { %v610_v48 = vpop.permute.xlu0 %609 }
 0xa0d   :  { %v612_v49 = vadd.f32 %v610_v48, %v602_v47 }
 0xa0f   :  { %1415 = vtanh.f32 %v612_v49 }
 0xa1c   :  { %v1416_v51 = vpop.eup %1415 }
 0xa1d   :  { %615 = vrot.lane.b32.xlu1 %v1416_v51, %s1536_s7 }
 0xa5b   :  { %v992_v51 = vpop.f32.mrf.mxu0 }
 0xa8f   :  { %v616_v52 = vpop.permute.xlu1 %615 }
 0xa90   :  { %v618_v53 = vmul.f32 %v616_v52, %v600_v44  ;;  %v1361_v52 = vpop.f32.mrf.mxu0 }
 0xa92   :  { %v1690_v54 = vpack.c.bf16 %v618_v53, %v618_v53  ;;  %v995_v53 = vpop.f32.mrf.mxu0 }
 0xa94   :  { %642 = vrot.lane.b32.xlu0 %v1690_v54, %s1528_s18 }
 0xb06   :  { %v643_v59 = vpop.permute.xlu0 %642 }
 0xb07   :  { %1326 = vmatmul.mubr.msk.bf16.vlgmr.msra.gmra.mxu1 %vm90_vm3, %v643_v59 }
 0xb08   :  { %1336 = vmatpush3.bf16.msra.mxu1 %v1591_v1  ;;  %1339 = vmatprep.mubr.msk.bf16.mxu1 %vm1535_vm1, %v1534_v0 }
 0xb09   :  { %1337 = vmatprep.subr.bf16.mxu1 %v1534_v0 }
 0xb0c   :  { %1338 = vmatpush3.bf16.msra.mxu1 %v1598_v4 }
 0xb0d   :  { %1349 = vmatprep.subr.bf16.mxu1 %v1534_v0 }
 0xbc7   :  { %v681_v61 = vpop.f32.mrf.mxu1 }
 0xbc8   :  { %v725_v62 = vadd.f32 %v724_v55, %v681_v61  ;;  %v1362_v55 = vpop.f32.mrf.mxu0 }
 0xbc9   :  { %v1327_v63 = vpop.f32.mrf.mxu1 }
 0xbca   :  { %v730_v3 = vadd.f32 %v1618_v9, %v725_v62 }
 0xbcb   :  { %v684_v5 = vpop.f32.mrf.mxu1 }
 0xbcc   :  { %1417 = vtanh.f32 %v730_v3  ;;  %v731_v8 = vmul.f32 0.5, %v730_v3 }
 0xbcd   :  { %v1328_v6 = vpop.f32.mrf.mxu1 }
 0xbce   :  { %1419 = vtanh.f32 %v731_v8 }
 0xbd9   :  { %v1418_v7 = vpop.eup %1417 }
 0xbda   :  { %738 = vrot.lane.b32.xlu1 %v1418_v7, %s1536_s7 }
 0xbdb   :  { %v1420_v10 = vpop.eup %1419 }
 0xbdc   :  { %v733_v11 = vmul.f32 0.5, %v1420_v10 }
 0xbde   :  { %v734_v12 = vadd.f32 0.5, %v733_v11  ;;  %v1043_v11 = vld [vmem:[#allocation4 + $0x7] sm:$0x1] }
 0xbdf   :  { %1374 = vmatmul.mubr.msk.bf16.vlgmr.msra.gmra.mxu0 %vm140_vm2, %v1043_v11 }
 0xbe0   :  { %v736_v15 = vmul.f32 %v734_v12, %v612_v49 }
 0xc4c   :  { %v739_v13 = vpop.permute.xlu1 %738 }
 0xc4d   :  { %v741_v14 = vmul.f32 %v739_v13, %v734_v12 }
 0xc4f   :  { %743 = vrot.lane.b32.xlu0 %v741_v14, %s1536_s7 }
 0xcc1   :  { %v744_v16 = vpop.permute.xlu0 %743 }
 0xcc2   :  { %v746_v17 = vadd.f32 %v744_v16, %v736_v15  ;;  %v1126_v16 = vpop.f32.mrf.mxu0 }
 0xcc4   :  { %1421 = vtanh.f32 %v746_v17 }
 0xcd1   :  { %v1422_v19 = vpop.eup %1421 }
 0xcd2   :  { %749 = vrot.lane.b32.xlu1 %v1422_v19, %s1536_s7 }
 0xd44   :  { %v750_v20 = vpop.permute.xlu1 %749 }
 0xd45   :  { %v752_v21 = vmul.f32 %v750_v20, %v734_v12 }
 0xd47   :  { %v1710_v22 = vpack.c.bf16 %v752_v21, %v752_v21 }
 0xd49   :  { %776 = vrot.lane.b32.xlu0 %v1710_v22, %s1528_s18 }
 0xdbb   :  { %v777_v28 = vpop.permute.xlu0 %776 }
 0xdbc   :  { %1340 = vmatmul.mubr.msk.bf16.vlgmr.msra.gmra.mxu1 %vm90_vm3, %v777_v28 }
 0xdbd   :  { %1350 = vmatpush3.bf16.msra.mxu1 %v1591_v1  ;;  %1353 = vmatprep.mubr.msk.bf16.mxu1 %vm1535_vm1, %v1534_v0 }
 0xdbe   :  { %1351 = vmatprep.subr.bf16.mxu1 %v1534_v0 }
 0xdc1   :  { %1352 = vmatpush3.bf16.msra.mxu1 %v1598_v4 }
 0xdc2   :  { %1363 = vmatprep.subr.bf16.mxu1 %v1534_v0 }
 0xe7c   :  { %v815_v29 = vpop.f32.mrf.mxu1 }
 0xe7d   :  { %v859_v30 = vadd.f32 %v858_v23, %v815_v29 }
 0xe7e   :  { %v1341_v31 = vpop.f32.mrf.mxu1 }
 0xe7f   :  { %v864_v32 = vadd.f32 %v1618_v9, %v859_v30  ;;  %v1537_v31 = vmov 1966171168  }
 0xe80   :  { %v818_v33 = vpop.f32.mrf.mxu1 }
 0xe81   :  { %1423 = vtanh.f32 %v864_v32  ;;  %v865_v37 = vmul.f32 0.5, %v864_v32  ;;  %v220_v32 = vunpack.c.l.s4 %v1537_v31  ;;  %v222_v33 = vlaneseq }
 0xe82   :  { %v1342_v35 = vpop.f32.mrf.mxu1 }
 0xe83   :  { %1425 = vtanh.f32 %v865_v37  ;;  %v223_v37 = vshrl.u32 %v222_v33, 7 }
 0xe8e   :  { %v1424_v36 = vpop.eup %1423 }
 0xe8f   :  { %872 = vrot.lane.b32.xlu1 %v1424_v36, %s1536_s7  ;;  %v221_v36 = vunpack.c.0.s8 %v220_v32 }
 0xe90   :  { %v1426_v38 = vpop.eup %1425 }
 0xe91   :  { %v867_v39 = vmul.f32 0.5, %v1426_v38 }
 0xe93   :  { %v868_v40 = vadd.f32 0.5, %v867_v39  ;;  %v224_v39 = vsub.s32 %v221_v36, %v223_v37 }
 0xe95   :  { %v870_v43 = vmul.f32 %v868_v40, %v746_v17  ;;  %v1375_v17 = vpop.f32.mrf.mxu0  ;;  %v359_v55 = vrot.slane %v1650_v60, %v224_v39 }
 0xe97   :  { %v1129_v18 = vpop.f32.mrf.mxu0 }
 0xe99   :  { %v1376_v19 = vpop.f32.mrf.mxu0 }
 0xf01   :  { %v873_v41 = vpop.permute.xlu1 %872 }
 0xf02   :  { %v875_v42 = vmul.f32 %v873_v41, %v868_v40 }
 0xf04   :  { %877 = vrot.lane.b32.xlu0 %v875_v42, %s1536_s7 }
 0xf76   :  { %v878_v44 = vpop.permute.xlu0 %877 }
 0xf77   :  { %v880_v45 = vadd.f32 %v878_v44, %v870_v43  ;;  %v493_v43 = vrot.slane %v1670_v27, %v224_v39 }
 0xf79   :  { %1427 = vtanh.f32 %v880_v45  ;;  %v500_v46 = vrot.slane %v493_v43, %v224_v39 }
 0xf86   :  { %v1428_v47 = vpop.eup %1427 }
 0xf87   :  { %883 = vrot.lane.b32.xlu1 %v1428_v47, %s1536_s7 }
 0xff9   :  { %v884_v48 = vpop.permute.xlu1 %883 }
 0xffa   :  { %v886_v49 = vmul.f32 %v884_v48, %v868_v40 }
 0xffc   :  { %v1729_v50 = vpack.c.bf16 %v886_v49, %v886_v49 }
 0xffe   :  { %910 = vrot.lane.b32.xlu0 %v1729_v50, %s1528_s18 }
0x1070   :  { %v911_v56 = vpop.permute.xlu0 %910 }
0x1071   :  { %1354 = vmatmul.mubr.msk.bf16.vlgmr.msra.gmra.mxu1 %vm90_vm3, %v911_v56 }
0x1072   :  { %1364 = vmatpush3.bf16.msra.mxu1 %v1591_v1  ;;  %1367 = vmatprep.mubr.msk.bf16.mxu1 %vm1535_vm1, %v1534_v0 }
0x1073   :  { %1365 = vmatprep.subr.bf16.mxu1 %v1534_v0 }
0x1076   :  { %1366 = vmatpush3.bf16.msra.mxu1 %v1598_v4 }
0x1131   :  { %v949_v2 = vpop.f32.mrf.mxu1 }
0x1132   :  { %v993_v57 = vadd.f32 %v992_v51, %v949_v2 }
0x1133   :  { %v1355_v58 = vpop.f32.mrf.mxu1 }
0x1134   :  { %v998_v59 = vadd.f32 %v1618_v9, %v993_v57  ;;  %v627_v57 = vrot.slane %v1690_v54, %v224_v39  ;;  %v366_v58 = vrot.slane %v359_v55, %v224_v39 }
0x1135   :  { %v952_v61 = vpop.f32.mrf.mxu1 }
0x1136   :  { %1429 = vtanh.f32 %v998_v59  ;;  %v999_v3 = vmul.f32 0.5, %v998_v59  ;;  %v895_v59 = vrot.slane %v1729_v50, %v224_v39  ;;  %v634_v61 = vrot.slane %v627_v57, %v224_v39 }
0x1137   :  { %v1356_v62 = vpop.f32.mrf.mxu1 }
0x1138   :  { %1431 = vtanh.f32 %v999_v3  ;;  %v902_v62 = vrot.slane %v895_v59, %v224_v39 }
0x1143   :  { %v1430_v63 = vpop.eup %1429 }
0x1144   :  { %1006 = vrot.lane.b32.xlu1 %v1430_v63, %s1536_s7 }
0x1145   :  { %v1432_v1 = vpop.eup %1431 }
0x1146   :  { %v1001_v5 = vmul.f32 0.5, %v1432_v1 }
0x1148   :  { %v1002_v6 = vadd.f32 0.5, %v1001_v5 }
0x114a   :  { %v1004_v4 = vmul.f32 %v1002_v6, %v880_v45  ;;  %v761_v45 = vrot.slane %v1710_v22, %v224_v39 }
0x114c   :  { %v768_v48 = vrot.slane %v761_v45, %v224_v39 }
0x11b6   :  { %v1007_v7 = vpop.permute.xlu1 %1006 }
0x11b7   :  { %v1009_v0 = vmul.f32 %v1007_v7, %v1002_v6 }
0x11b9   :  { %1011 = vrot.lane.b32.xlu0 %v1009_v0, %s1536_s7 }
0x122b   :  { %v1012_v8 = vpop.permute.xlu0 %1011 }
0x122c   :  { %v1014_v10 = vadd.f32 %v1012_v8, %v1004_v4 }
0x122e   :  { %1433 = vtanh.f32 %v1014_v10 }
0x123b   :  { %v1434_v12 = vpop.eup %1433 }
0x123c   :  { %1017 = vrot.lane.b32.xlu1 %v1434_v12, %s1536_s7 }
0x12ae   :  { %v1018_v13 = vpop.permute.xlu1 %1017 }
0x12af   :  { %v1020_v14 = vmul.f32 %v1018_v13, %v1002_v6 }
0x12b1   :  { %v1021_v15 = vpack.c.bf16 %v1020_v14, %v1020_v14 }
0x12b3   :  { %1044 = vrot.lane.b32.xlu0 %v1021_v15, %s1528_s18  ;;  %v1029_v47 = vrot.slane %v1021_v15, %v224_v39 }
0x12b5   :  { %v1036_v49 = vrot.slane %v1029_v47, %v224_v39 }
0x1325   :  { %v1045_v20 = vpop.permute.xlu0 %1044 }
0x1326   :  { %1368 = vmatmul.mubr.msk.bf16.vlgmr.msra.gmra.mxu1 %vm90_vm3, %v1045_v20 }
0x13e6   :  { %v1083_v21 = vpop.f32.mrf.mxu1 }
0x13e7   :  { %v1127_v23 = vadd.f32 %v1126_v16, %v1083_v21 }
0x13e8   :  { %v1369_v24 = vpop.f32.mrf.mxu1 }
0x13e9   :  { %v1132_v25 = vadd.f32 %v1618_v9, %v1127_v23  ;;  %v225_v9 = vrot.slane %v1630_v34, %v224_v39 }
0x13ea   :  { %v1086_v26 = vpop.f32.mrf.mxu1 }
0x13eb   :  { %1435 = vtanh.f32 %v1132_v25  ;;  %v1133_v30 = vmul.f32 0.5, %v1132_v25  ;;  %v232_v44 = vrot.slane %v225_v9, %v224_v39 }
0x13ec   :  { %v1370_v28 = vpop.f32.mrf.mxu1 }
0x13ed   :  { %1437 = vtanh.f32 %v1133_v30 }
0x13f8   :  { %v1436_v29 = vpop.eup %1435 }
0x13f9   :  { %1140 = vrot.lane.b32.xlu1 %v1436_v29, %s1536_s7 }
0x13fa   :  { %v1438_v35 = vpop.eup %1437 }
0x13fb   :  { %v1135_v38 = vmul.f32 0.5, %v1438_v35 }
0x13fd   :  { %v1136_v40 = vadd.f32 0.5, %v1135_v38 }
0x13ff   :  { %v1138_v34 = vmul.f32 %v1136_v40, %v1014_v10 }
0x146b   :  { %v1141_v41 = vpop.permute.xlu1 %1140 }
0x146c   :  { %v1143_v42 = vmul.f32 %v1141_v41, %v1136_v40 }
0x146e   :  { %1145 = vrot.lane.b32.xlu0 %v1143_v42, %s1536_s7 }
0x1472   :  { %233 = vrot.lane.b32.xlu0 %v232_v44, %s1528_s18 }
0x1476   :  { %501 = vrot.lane.b32.xlu0 %v500_v46, %s1528_s18 }
0x147a   :  { %769 = vrot.lane.b32.xlu0 %v768_v48, %s1528_s18 }
0x147e   :  { %1037 = vrot.lane.b32.xlu0 %v1036_v49, %s1528_s18 }
0x14e0   :  { %v1146_v51 = vpop.permute.xlu0 %1145 }
0x14e1   :  { %v1148_v52 = vadd.f32 %v1146_v51, %v1138_v34 }
0x14e3   :  { %1439 = vtanh.f32 %v1148_v52 }
0x14e4   :  { %v234_v27 = vpop.permute.xlu0 %233 }
0x14e5   :  { %237 = vst.msk [vmem:[#allocation10] sm:$0x1] %vm236_vm4, %v234_v27 }
0x14e8   :  { %v502_v53 = vpop.permute.xlu0 %501 }
0x14e9   :  { %505 = vst.msk [vmem:[#allocation10 + $0x2] sm:$0x1] %vm236_vm4, %v502_v53 }
0x14ec   :  { %v770_v22 = vpop.permute.xlu0 %769 }
0x14ed   :  { %773 = vst.msk [vmem:[#allocation10 + $0x4] sm:$0x1] %vm236_vm4, %v770_v22 }
0x14f0   :  { %v1440_v56 = vpop.eup %1439  ;;  %v1038_v2 = vpop.permute.xlu0 %1037 }
0x14f1   :  { %1041 = vst.msk [vmem:[#allocation10 + $0x6] sm:$0x1] %vm236_vm4, %v1038_v2  ;;  %1151 = vrot.lane.b32.xlu1 %v1440_v56, %s1536_s7 }
0x14f5   :  { %367 = vrot.lane.b32.xlu1 %v366_v58, %s1528_s18 }
0x14f9   :  { %635 = vrot.lane.b32.xlu1 %v634_v61, %s1528_s18 }
0x14fd   :  { %903 = vrot.lane.b32.xlu1 %v902_v62, %s1528_s18 }
0x1563   :  { %v1152_v60 = vpop.permute.xlu1 %1151 }
0x1564   :  { %v1154_v63 = vmul.f32 %v1152_v60, %v1136_v40 }
0x1566   :  { %v1155_v3 = vpack.c.bf16 %v1154_v63, %v1154_v63  ;;  %1177 = vrot.lane.b32.xlu0 %v1154_v63, %s1528_s18 }
0x1567   :  { %v368_v1 = vpop.permute.xlu1 %367 }
0x1568   :  { %371 = vst.msk [vmem:[#allocation10 + $0x1] sm:$0x1] %vm236_vm4, %v368_v1  ;;  %v1163_v54 = vrot.slane %v1155_v3, %v224_v39 }
0x156a   :  { %v1170_v5 = vrot.slane %v1163_v54, %v224_v39 }
0x156b   :  { %v636_v6 = vpop.permute.xlu1 %635 }
0x156c   :  { %639 = vst.msk [vmem:[#allocation10 + $0x3] sm:$0x1] %vm236_vm4, %v636_v6  ;;  %1171 = vrot.lane.b32.xlu1 %v1170_v5, %s1528_s18 }
0x156f   :  { %v904_v50 = vpop.permute.xlu1 %903 }
0x1570   :  { %907 = vst.msk [vmem:[#allocation10 + $0x5] sm:$0x1] %vm236_vm4, %v904_v50  ;;  %1183 = vrot.lane.b32.xlu1 %v1148_v52, %s1538_s2 }
0x15d8   :  { %v1178_v7 = vpop.permute.xlu0 %1177 }
0x15d9   :  { %1181 = vst.msk [vmem:[#allocation2] sm:$0x3] %vm64_vm0, %v1178_v7 }
0x15de   :  { %v1172_v0 = vpop.permute.xlu1 %1171 }
0x15df   :  { %1175 = vst.msk [vmem:[#allocation10 + $0x7] sm:$0x1] %vm236_vm4, %v1172_v0 }
0x15e0   :  { %1512 = shalt.err (!%p1509_p5)
}
0x15e1   :  { %1198 = dma.vmem_to_hbm [thread:$0]  %s1193_s9, 128, %s1785_s4, [#allocation6], %s1531_s25, %s1531_s25, %s1532_s26  }
0x15e2   :  { %v1184_v4 = vpop.permute.xlu1 %1183 }
0x15e3   :  { %1186 = vst.msk [vmem:[#allocation3] sm:$0x3] %vm64_vm0, %v1184_v4 }
0x15e4   :  { %1525 = dma.done.wait [#allocation6], 128  }
0x15e5   :  { %1526 = vsyncadd [#allocation6], 4294967168 }
0x15e6   :  { %1202 = vsyncpa [#allocation5], 1 }
0x15e7   :  { %1203 = vsyncpa [#allocation8], 1 }
0x15e8   :  { %1204 = vsyncpa [#allocation6], 1 }

</bundles_post_ra>
